<compile_context>
chip_gen: v6e
topology: v6e:2x2x1
jax: 0.10.0
libtpu: 0.0.40
codegen_flags: <defaults>
</compile_context>

<pallas_src>
import functools
import math
from typing import NamedTuple

import jax
import jax.numpy as jnp
from jax.experimental import pallas as pl
from jax.experimental.pallas import tpu as pltpu

ACT_EMB_DIM = 4  # act_enc = nn.Linear(1, 4)


def _cdiv(a, b):
    return -(-a // b)


def _round_up(a, m):
    return _cdiv(a, m) * m


class _Blk(NamedTuple):
    """Static layout of one fused residual block inside the packed operands."""
    wa_off: int    # row offset of Wa (or Wa_obs for block 0) in w_all
    d_in: int      # rows of Wa actually used
    two_d: int     # 2 * d_out (columns of Wa, rows of Wb)
    d_out: int     # block output width (pre output-padding)
    wb_off: int    # row offset of Wb in w_all
    out_cols: int  # columns of Wb (== d_out, or padded to 128-mult for last block)
    ba_row: int    # row of ba in b_all
    bb_row: int    # row of bb in b_all
    wf_row: int    # row of the rank-1 folded act term (block 0 only, else -1)


# ------------------------------- Pallas kernel ------------------------------ #

def _fused_kernel(obs_ref, act_ref, w_ref, b_ref, o_ref, *, blocks, post_acts):
    """Entire ResidualMLP_Cartpole_Combined forward for one batch tile."""
    f32 = jnp.float32
    x = obs_ref[...].astype(f32)          # (tb, obs_dim)
    act = act_ref[...].astype(f32)        # (tb, 1)

    masks = {}                            # hoisted lane-masks, reused across blocks
    for k, blk in enumerate(blocks):
        wa = w_ref[blk.wa_off:blk.wa_off + blk.d_in, :blk.two_d]
        ba = b_ref[blk.ba_row:blk.ba_row + 1, :blk.two_d]

        # t = [h_pre | res] = x @ [W1|Wr] + [b1|br]  (+ folded act term on block 0)
        t = jnp.dot(x, wa, preferred_element_type=f32) + ba
        if blk.wf_row >= 0:
            wf = b_ref[blk.wf_row:blk.wf_row + 1, :blk.two_d]
            t = t + act * wf              # rank-1 VPU outer product (act encoder)

        # relu on the first d_out lanes (hidden branch), pass-through on the
        # residual lanes — one select, no lane movement.  Mask built once per
        # distinct (shape, d_out).
        key = (t.shape, blk.d_out)
        if key not in masks:
            lane = jax.lax.broadcasted_iota(jnp.int32, t.shape, 1)
            masks[key] = lane < blk.d_out
        g = jnp.where(masks[key], jnp.maximum(t, 0.0), t)

        # [relu(h) | res] @ [[W2],[I]] + b2  ==  relu(h)@W2 + b2 + res
        wb = w_ref[blk.wb_off:blk.wb_off + blk.two_d, :blk.out_cols]
        bb = b_ref[blk.bb_row:blk.bb_row + 1, :blk.out_cols]
        x = jnp.dot(g, wb, preferred_element_type=f32) + bb

        pa = post_acts[k]
        if pa == "relu":
            x = jnp.maximum(x, 0.0)
        elif pa == "tanh":
            x = jnp.tanh(x)
        # 'gelu' (module default): PyTorch ResidualMLP appends nothing.

    o_ref[...] = x.astype(o_ref.dtype)


# ------------------------------ jitted wrapper ------------------------------- #

def _row_map(i):
    return (i, 0)


def _full_map(i):
    return (0, 0)


@functools.partial(jax.jit, static_argnames=("blocks", "post_acts", "d_final"))
def _forward(robo, act, w_all, b_all, blocks, post_acts, d_final):
    B, obs_dim = robo.shape

    # Batch tiling: single tile for tiny batches; >=2 grid steps for B>=64 so
    # v7x's two TensorCores both get work; tiles capped at 512 rows.
    if B < 64:
        tb = B
    else:
        tb = min(512, _round_up(_cdiv(B, 2), 8))
    Bp = _cdiv(B, tb) * tb
    if Bp != B:
        robo = jnp.pad(robo, ((0, Bp - B), (0, 0)))
        act = jnp.pad(act, ((0, Bp - B), (0, 0)))

    out_cols = blocks[-1].out_cols        # lane-dense (128-multiple) output width
    kernel = functools.partial(_fused_kernel, blocks=blocks, post_acts=post_acts)

    out = pl.pallas_call(
        kernel,
        out_shape=jax.ShapeDtypeStruct((Bp, out_cols), robo.dtype),
        grid_spec=pl.GridSpec(
            grid=(Bp // tb,),
            in_specs=[
                pl.BlockSpec((tb, obs_dim), _row_map),     # obs tile
                pl.BlockSpec((tb, 1), _row_map),           # act tile
                pl.BlockSpec(w_all.shape, _full_map),      # packed weights
                pl.BlockSpec(b_all.shape, _full_map),      # packed biases / rank-1
            ],
            out_specs=pl.BlockSpec((tb, out_cols), _row_map),
        ),
        compiler_params=pltpu.CompilerParams(
            dimension_semantics=("parallel",)),
    )(robo, act, w_all, b_all)

    return out[:B, :d_final]


# --------------------------------- module ------------------------------------ #

class ResidualMLPCartpoleCombinedPallas:
    """Mirror of ResidualMLP_Cartpole_Combined.forward(obs, act)."""

    def __init__(self, dim_list, final_nonlinearity=True, nonlinearity="gelu",
                 dropout=0.0, key=None, dtype=jnp.float32):
        # TODO(synk): dropout (train mode) not implemented — module default is 0.0.
        if key is None:
            key = jax.random.PRNGKey(0)
        self.dtype = dtype
        self.dim_list = tuple(int(d) for d in dim_list)
        self.obs_dim = self.dim_list[0] - ACT_EMB_DIM
        assert self.obs_dim > 0, "dim_list[0] must equal obs_dim + 4"

        n_blocks = len(self.dim_list) - 1
        keys = jax.random.split(key, n_blocks + 1)

        gain = math.sqrt(2.0)                       # calculate_gain('relu')
        ortho_g = jax.nn.initializers.orthogonal(scale=gain)
        ortho_1 = jax.nn.initializers.orthogonal(scale=1.0)

        # act_enc: Linear(1, 4), orthogonal gain=1, zero bias; stored as (in,out).
        self.w_act = ortho_1(keys[-1], (1, ACT_EMB_DIM), dtype)
        self.b_act = jnp.zeros((1, ACT_EMB_DIM), dtype)

        # Raw per-block params (kept for the pure-JAX reference).
        self.raw_blocks = []
        post_acts = []
        for idx, (d_in, d_out) in enumerate(zip(self.dim_list[:-1],
                                                self.dim_list[1:])):
            k1, k2, kr = jax.random.split(keys[idx], 3)
            w1 = ortho_g(k1, (d_in, d_out), dtype)    # (in, out): y = x @ W + b
            w2 = ortho_g(k2, (d_out, d_out), dtype)
            wr = ortho_g(kr, (d_in, d_out), dtype)
            b1 = jnp.zeros((1, d_out), dtype)
            b2 = jnp.zeros((1, d_out), dtype)
            br = jnp.zeros((1, d_out), dtype)
            self.raw_blocks.append((w1, b1, w2, b2, wr, br))
            if idx == n_blocks - 1 and (not final_nonlinearity):
                post_acts.append(None)
                break
            post_acts.append(
                nonlinearity if nonlinearity in ("relu", "tanh") else None)
        self.post_acts = tuple(post_acts)

        # ---- host-side fusion + packing of all weights into 2 flat operands ----
        w_chunks, b_chunks, blocks = [], [], []
        w_row, b_row, max_cols = 0, 0, 0

        for k, (w1, b1, w2, b2, wr, br) in enumerate(self.raw_blocks):
            d_in, d_out = w1.shape
            two_d = 2 * d_out
            is_last = (k == n_blocks - 1)

            wa = jnp.concatenate([w1, wr], axis=1)                # (d_in, 2d)
            ba = jnp.concatenate([b1, br], axis=1)                # (1, 2d)
            out_cols = _round_up(d_out, 128) if is_last else d_out
            wb = jnp.concatenate([w2, jnp.eye(d_out, dtype=dtype)], axis=0)
            bb = b2
            if out_cols != d_out:                                 # lane-dense output
                wb = jnp.pad(wb, ((0, 0), (0, out_cols - d_out)))
                bb = jnp.pad(bb, ((0, 0), (0, out_cols - d_out)))

            wf_row = -1
            if k == 0:
                # Fold act encoder + block-0 act-embed matmul into a rank-1 term.
                wa_obs = wa[:self.obs_dim]                        # (obs_dim, 2d)
                wa_emb = wa[self.obs_dim:]                        # (4, 2d)
                w_fold = self.w_act @ wa_emb                      # (1, 2d)
                ba = ba + self.b_act @ wa_emb                     # fold act bias
                wa_k, d_in_k = wa_obs, self.obs_dim
            else:
                wa_k, d_in_k = wa, d_in

            wa_off = w_row; w_row += _round_up(d_in_k, 8)
            wb_off = w_row; w_row += _round_up(two_d, 8)
            ba_row = b_row; b_row += 1
            bb_row = b_row; b_row += 1
            if k == 0:
                wf_row = b_row; b_row += 1
                b_chunks.append((wf_row, w_fold))

            w_chunks += [(wa_off, wa_k), (wb_off, wb)]
            b_chunks += [(ba_row, ba), (bb_row, bb)]
            max_cols = max(max_cols, two_d, out_cols)
            blocks.append(_Blk(wa_off, d_in_k, two_d, d_out, wb_off, out_cols,
                               ba_row, bb_row, wf_row))

        wcol = _round_up(max_cols, 128)
        w_all = jnp.zeros((_round_up(w_row, 8), wcol), dtype)
        for off, arr in w_chunks:
            w_all = w_all.at[off:off + arr.shape[0], :arr.shape[1]].set(arr)
        b_all = jnp.zeros((_round_up(b_row, 8), wcol), dtype)
        for row, arr in b_chunks:
            b_all = b_all.at[row:row + 1, :arr.shape[1]].set(arr)

        self.w_all = w_all
        self.b_all = b_all
        self._blocks = tuple(blocks)

    def __call__(self, obs, act):
        robo = obs["robot"]
        B, obs_dim = robo.shape
        assert obs_dim == self.obs_dim
        assert act.shape == (B, 1), f"act shape {act.shape} vs {(B, 1)}"
        y = _forward(robo, act, self.w_all, self.b_all,
                     blocks=self._blocks, post_acts=self.post_acts,
                     d_final=self.dim_list[-1])
        return y, None


# ----------------------------- reference (JAX) ------------------------------ #

def reference_forward(model, obs_robot, act):
    act_embed = act @ model.w_act + model.b_act
    x = jnp.concatenate([obs_robot, act_embed], axis=1)
    for (w1, b1, w2, b2, wr, br), pa in zip(model.raw_blocks, model.post_acts):
        h = jnp.maximum(x @ w1 + b1, 0.0)
        x = h @ w2 + b2 + x @ wr + br
        if pa == "relu":
            x = jnp.maximum(x, 0.0)
        elif pa == "tanh":
            x = jnp.tanh(x)
    return x, None


# ----------------------------------- main ------------------------------------ #

if __name__ == "__main__":
    key = jax.random.PRNGKey(0)
    k_params, k_obs, k_act = jax.random.split(key, 3)

    obs_dim = 4                                    # cartpole observation
    dim_list = [obs_dim + ACT_EMB_DIM, 64, 64]     # two ResidualBlocks

    model = ResidualMLPCartpoleCombinedPallas(
        dim_list, final_nonlinearity=True, nonlinearity="gelu",
        dropout=0.0, key=k_params)

    # small batch (single-tile path)
    B = 8
    obs = {"robot": jax.random.normal(k_obs, (B, obs_dim), dtype=jnp.float32)}
    act = jax.random.normal(k_act, (B, 1), dtype=jnp.float32)

    y, aux = model(obs, act)
    y = jax.block_until_ready(y)
    y_ref, _ = reference_forward(model, obs["robot"], act)
    assert aux is None
    assert y.shape == (B, dim_list[-1])
    assert jnp.allclose(y, y_ref, atol=1e-3, rtol=1e-3), "mismatch (small batch)"

    # larger batch (multi-tile / dual-core path)
    B2 = 96
    obs2 = {"robot": jax.random.normal(k_obs, (B2, obs_dim), dtype=jnp.float32)}
    act2 = jax.random.normal(k_act, (B2, 1), dtype=jnp.float32)
    y2, _ = model(obs2, act2)
    y2 = jax.block_until_ready(y2)
    y2_ref, _ = reference_forward(model, obs2["robot"], act2)
    assert y2.shape == (B2, dim_list[-1])
    assert jnp.allclose(y2, y2_ref, atol=1e-3, rtol=1e-3), "mismatch (large batch)"

    print("KERNEL_OK")
</pallas_src>

<mosaic_0001>
module attributes {stable_mosaic.version = 11 : i64} {
  func.func @_fused_kernel(%arg0: i32, %arg1: memref<8x4xf32, #tpu.memory_space<vmem>>, %arg2: memref<8x1xf32, #tpu.memory_space<vmem>>, %arg3: memref<328x128xf32, #tpu.memory_space<vmem>>, %arg4: memref<8x128xf32, #tpu.memory_space<vmem>>, %arg5: memref<8x128xf32, #tpu.memory_space<vmem>>) attributes {dimension_semantics = [#tpu.dimension_semantics<parallel>], iteration_bounds = array<i64: 1>, scalar_prefetch = 0 : i64, scratch_operands = 0 : i64, tpu.core_type = #tpu.core_type<tc>, window_params = [{transform_indices = @transform_0, window_bounds = array<i64: 8, 4>}, {transform_indices = @transform_1, window_bounds = array<i64: 8, 1>}, {pipeline_mode = #tpu.pipeline_mode<synchronous>, transform_indices = @transform_2, window_bounds = array<i64: 328, 128>}, {pipeline_mode = #tpu.pipeline_mode<synchronous>, transform_indices = @transform_3, window_bounds = array<i64: 8, 128>}, {transform_indices = @transform_4, window_bounds = array<i64: 8, 128>}]} {
    %c0 = arith.constant 0 : index
    %c0_0 = arith.constant 0 : index
    %0 = vector.load %arg1[%c0, %c0_0] : memref<8x4xf32, #tpu.memory_space<vmem>>, vector<8x4xf32>
    %c0_1 = arith.constant 0 : index
    %c0_2 = arith.constant 0 : index
    %1 = vector.load %arg2[%c0_1, %c0_2] : memref<8x1xf32, #tpu.memory_space<vmem>>, vector<8x1xf32>
    %c0_3 = arith.constant 0 : index
    %c0_4 = arith.constant 0 : index
    %2 = vector.load %arg3[%c0_3, %c0_4] : memref<328x128xf32, #tpu.memory_space<vmem>>, vector<4x128xf32>
    %c0_5 = arith.constant 0 : index
    %c0_6 = arith.constant 0 : index
    %3 = vector.load %arg4[%c0_5, %c0_6] : memref<8x128xf32, #tpu.memory_space<vmem>>, vector<1x128xf32>
    %cst = arith.constant dense<0.000000e+00> : vector<8x128xf32>
    %4 = tpu.matmul %0, %2, %cst {dimension_numbers = #tpu.dot_dimension_numbers<[1], [0], [0], [1], [0, 0, 1, 1], [], []>} : vector<8x4xf32>, vector<4x128xf32>, vector<8x128xf32> -> vector<8x128xf32>
    %5 = vector.broadcast %3 : vector<1x128xf32> to vector<8x128xf32>
    %6 = arith.addf %4, %5 : vector<8x128xf32>
    %c2 = arith.constant 2 : index
    %c0_7 = arith.constant 0 : index
    %7 = vector.load %arg4[%c2, %c0_7] : memref<8x128xf32, #tpu.memory_space<vmem>>, vector<1x128xf32>
    %8 = vector.broadcast %1 : vector<8x1xf32> to vector<8x128xf32>
    %9 = vector.broadcast %7 : vector<1x128xf32> to vector<8x128xf32>
    %10 = arith.mulf %8, %9 : vector<8x128xf32>
    %11 = arith.addf %6, %10 : vector<8x128xf32>
    %12 = tpu.iota {dimensions = array<i32: 1>} : vector<8x128xi32>
    %c64_i32 = arith.constant 64 : i32
    %13 = vector.broadcast %c64_i32 : i32 to vector<8x128xi32>
    %14 = arith.cmpi slt, %12, %13 : vector<8x128xi32>
    %cst_8 = arith.constant 0.000000e+00 : f32
    %15 = vector.broadcast %cst_8 : f32 to vector<8x128xf32>
    %16 = arith.maximumf %11, %15 : vector<8x128xf32>
    %17 = arith.select %14, %16, %11 : vector<8x128xi1>, vector<8x128xf32>
    %c8 = arith.constant 8 : index
    %c0_9 = arith.constant 0 : index
    %18 = vector.load %arg3[%c8, %c0_9] : memref<328x128xf32, #tpu.memory_space<vmem>>, vector<128x64xf32>
    %c1 = arith.constant 1 : index
    %c0_10 = arith.constant 0 : index
    %19 = vector.load %arg4[%c1, %c0_10] : memref<8x128xf32, #tpu.memory_space<vmem>>, vector<1x64xf32>
    %cst_11 = arith.constant dense<0.000000e+00> : vector<8x64xf32>
    %20 = tpu.matmul %17, %18, %cst_11 {dimension_numbers = #tpu.dot_dimension_numbers<[1], [0], [0], [1], [0, 0, 1, 1], [], []>} : vector<8x128xf32>, vector<128x64xf32>, vector<8x64xf32> -> vector<8x64xf32>
    %21 = vector.broadcast %19 : vector<1x64xf32> to vector<8x64xf32>
    %22 = arith.addf %20, %21 : vector<8x64xf32>
    %c136 = arith.constant 136 : index
    %c0_12 = arith.constant 0 : index
    %23 = vector.load %arg3[%c136, %c0_12] : memref<328x128xf32, #tpu.memory_space<vmem>>, vector<64x128xf32>
    %c3 = arith.constant 3 : index
    %c0_13 = arith.constant 0 : index
    %24 = vector.load %arg4[%c3, %c0_13] : memref<8x128xf32, #tpu.memory_space<vmem>>, vector<1x128xf32>
    %cst_14 = arith.constant dense<0.000000e+00> : vector<8x128xf32>
    %25 = tpu.matmul %22, %23, %cst_14 {dimension_numbers = #tpu.dot_dimension_numbers<[1], [0], [0], [1], [0, 0, 1, 1], [], []>} : vector<8x64xf32>, vector<64x128xf32>, vector<8x128xf32> -> vector<8x128xf32>
    %26 = vector.broadcast %24 : vector<1x128xf32> to vector<8x128xf32>
    %27 = arith.addf %25, %26 : vector<8x128xf32>
    %cst_15 = arith.constant 0.000000e+00 : f32
    %28 = vector.broadcast %cst_15 : f32 to vector<8x128xf32>
    %29 = arith.maximumf %27, %28 : vector<8x128xf32>
    %30 = arith.select %14, %29, %27 : vector<8x128xi1>, vector<8x128xf32>
    %c200 = arith.constant 200 : index
    %c0_16 = arith.constant 0 : index
    %31 = vector.load %arg3[%c200, %c0_16] : memref<328x128xf32, #tpu.memory_space<vmem>>, vector<128x128xf32>
    %c4 = arith.constant 4 : index
    %c0_17 = arith.constant 0 : index
    %32 = vector.load %arg4[%c4, %c0_17] : memref<8x128xf32, #tpu.memory_space<vmem>>, vector<1x128xf32>
    %cst_18 = arith.constant dense<0.000000e+00> : vector<8x128xf32>
    %33 = tpu.matmul %30, %31, %cst_18 {dimension_numbers = #tpu.dot_dimension_numbers<[1], [0], [0], [1], [0, 0, 1, 1], [], []>} : vector<8x128xf32>, vector<128x128xf32>, vector<8x128xf32> -> vector<8x128xf32>
    %34 = vector.broadcast %32 : vector<1x128xf32> to vector<8x128xf32>
    %35 = arith.addf %33, %34 : vector<8x128xf32>
    %c0_19 = arith.constant 0 : index
    %c0_20 = arith.constant 0 : index
    %36 = vector.load %arg5[%c0_19, %c0_20] : memref<8x128xf32, #tpu.memory_space<vmem>>, vector<8x128xf32>
    tpu.vector_store %arg5[%c0_19, %c0_20], %35 {strides = array<i32>} : memref<8x128xf32, #tpu.memory_space<vmem>>, vector<8x128xf32>,
    return
  }
  func.func @transform_0(%arg0: i32) -> (i32, i32) {
    %c0_i32 = arith.constant 0 : i32
    %c0_i32_0 = arith.constant 0 : i32
    return %arg0, %c0_i32 : i32, i32
  }
  func.func @transform_1(%arg0: i32) -> (i32, i32) {
    %c0_i32 = arith.constant 0 : i32
    %c0_i32_0 = arith.constant 0 : i32
    return %arg0, %c0_i32 : i32, i32
  }
  func.func @transform_2(%arg0: i32) -> (i32, i32) {
    %c0_i32 = arith.constant 0 : i32
    %c0_i32_0 = arith.constant 0 : i32
    %c0_i32_1 = arith.constant 0 : i32
    return %c0_i32, %c0_i32_0 : i32, i32
  }
  func.func @transform_3(%arg0: i32) -> (i32, i32) {
    %c0_i32 = arith.constant 0 : i32
    %c0_i32_0 = arith.constant 0 : i32
    %c0_i32_1 = arith.constant 0 : i32
    return %c0_i32, %c0_i32_0 : i32, i32
  }
  func.func @transform_4(%arg0: i32) -> (i32, i32) {
    %c0_i32 = arith.constant 0 : i32
    %c0_i32_0 = arith.constant 0 : i32
    return %arg0, %c0_i32 : i32, i32
  }
}

</mosaic_0001>

<bundles_post_ra>
// kernel: _forward.1
= control target key start
LH: loop header
LB: loop body
LE: loop exit
PB: predicated region body
PF: predicated region fallthrough
CT: control target
= control target key end

     0   :  { %9 = vsyncpa [#allocation3], 0  ;;  %s736_s0 = inlined_call_operand.vmem [shape: f32[8,4], index: 0, kind: input, shape index: {}]   ;;  %s737_s1 = inlined_call_operand.vmem [shape: f32[8,1], index: 1, kind: input, shape index: {}]   ;;  %s738_s2 = inlined_call_operand.hbm [shape: f32[328,128], index: 2, kind: input, shape index: {}]   ;;  %s739_s3 = inlined_call_operand.vmem [shape: f32[8,128], index: 3, kind: input, shape index: {}]   ;;  %s740_s4 = inlined_call_operand.hbm [shape: f32[8,128], index: 4, kind: output, shape index: {}]  }
   0x1   :  { %10 = vsyncpa [#allocation4], 0  ;;  %s621_s15 = smov [#allocation2]  }
   0x2   :  { %s20_s16 = sshll.u32 %s621_s15, 4  ;;  %s21_s16 = int_to_ptr.vmem [resolvable:$true] %s20_s16 }
   0x3   :  { %s585_s17 = scalar_lea.vmem %s21_s16, 5248  ;;  %p590_p1 = scmp.lt.s32.totalorder %s21_s16, %s21_s16 }
   0x4   :  { %p586_p0 = scmp.ne.s32.totalorder %s21_s16, %s585_s17  ;;  %p591_p2 = scmp.lt.s32.totalorder %s585_s17, %s585_s17 }
   0x6   :  { %p592_p3 = por %p591_p2, %p590_p1 }
   0x8   :  { %p593_p4 = pnand %p592_p3, %p586_p0 }
   0xa   :  { %596 = shalt.err (!%p593_p4)
}
   0xb   :  { %s622_s18 = smov 128   ;;  %s623_s19 = smov 8  }
   0xc   :  { %26 = dma.hbm_to_vmem [thread:$0]  %s738_s2, 5248, %s21_s16, [#allocation3], %s622_s18, %s622_s18, %s623_s19  }
   0xd   :  { %617 = dma.done.wait [#allocation3], 5248  }
   0xe   :  { %618 = vsyncadd [#allocation3], 4294962048  ;;  %v624_v0 = vmov 0.0   ;;  %vm625_vm0 = vmmov 0   ;;  %v626_v1 = vmov 0   ;;  %vm44_vm1 = vcmask 1043456  }
   0xf   :  { %475 = vmatprep.subr.mxu1 %v624_v0  ;;  %477 = vmatprep.mubr.msk.f32.mxu1 %vm625_vm0, %v624_v0  ;;  %vm40_vm2 = vcmask 31744   ;;  %v34_v2 = vld [vmem:[#allocation2] sm:$0xf]  ;;  %v149_v6 = vld [vmem:[#allocation2 + $0x78] sm:$0xff]  ;;  %v148_v7 = vld [vmem:[#allocation2 + $0x70] sm:$0xff]  ;;  %v130_v29 = vlaneseq  ;;  %vm239_vm4 = vcmask 523264  }
  0x10   :  { %576 = vset.pattern.permute.xlu0 %v626_v1  ;;  %515 = vmatprep.subr.mxu0 %v624_v0  ;;  %v32_v3 = vld [vmem:[%s736_s0] sm:$0xff]  ;;  %v147_v8 = vld [vmem:[#allocation2 + $0x68] sm:$0xff]  ;;  %v145_v10 = vld [vmem:[#allocation2 + $0x58] sm:$0xff]  ;;  %s627_s7 = smov [#allocation5]  }
  0x11   :  { %531 = vmatprep.mubr.msk.f32.mxu0 %vm625_vm0, %v624_v0  ;;  %v33_v4 = vld [vmem:[%s737_s1] sm:$0xff]  ;;  %476 = vmatpush3.msk.msra.mxu1 %vm44_vm1, %v34_v2  ;;  %v144_v11 = vld [vmem:[#allocation2 + $0x50] sm:$0xff]  ;;  %v143_v12 = vld [vmem:[#allocation2 + $0x48] sm:$0xff]  ;;  %v698_v33 = vand.u32 127, %v130_v29  ;;  %s413_s8 = sshll.u32 %s627_s7, 4  ;;  %s414_s8 = int_to_ptr.vmem [resolvable:$true] %s413_s8 }
  0x12   :  { %121 = vperm.xlu0 %576, %v33_v4   ;;  %v150_v5 = vld [vmem:[#allocation2 + $0x80] sm:$0xff]  ;;  %478 = vmatmul.mubr.msk.f32.vlgmr.msra.gmra.mxu1 %vm40_vm2, %v32_v3  ;;  %v141_v14 = vld [vmem:[#allocation2 + $0x38] sm:$0xff]  ;;  %v140_v15 = vld [vmem:[#allocation2 + $0x30] sm:$0xff]  ;;  %s597_s9 = scalar_lea.vmem %s414_s8, 128  ;;  %p602_p6 = scmp.lt.s32.totalorder %s414_s8, %s414_s8 }
  0x13   :  { %480 = vmatprep.subr.mxu1 %v624_v0  ;;  %512 = vmatprep.mubr.msk.f32.mxu1 %vm625_vm0, %v624_v0  ;;  %v146_v9 = vld [vmem:[#allocation2 + $0x60] sm:$0xff]  ;;  %v139_v16 = vld [vmem:[#allocation2 + $0x28] sm:$0xff]  ;;  %v137_v18 = vld [vmem:[#allocation2 + $0x18] sm:$0xff]  ;;  %vm132_vm3 = vcmp.lt.s32.totalorder %v698_v33, 64  ;;  %p598_p5 = scmp.ne.s32.totalorder %s414_s8, %s597_s9  ;;  %p603_p7 = scmp.lt.s32.totalorder %s597_s9, %s597_s9 }
  0x14   :  { %481 = vmatpush3.msra.mxu1 %v150_v5  ;;  %v142_v13 = vld [vmem:[#allocation2 + $0x40] sm:$0xff]  ;;  %v136_v19 = vld [vmem:[#allocation2 + $0x10] sm:$0xff]  ;;  %v135_v20 = vld [vmem:[#allocation2 + $0x8] sm:$0xff] }
  0x15   :  { %482 = vmatprep.subr.mxu1 %v624_v0  ;;  %v138_v17 = vld [vmem:[#allocation2 + $0x20] sm:$0xff]  ;;  %v232_v22 = vld [vmem:[#allocation2 + $0xb8] sm:$0xff]  ;;  %v231_v23 = vld [vmem:[#allocation2 + $0xb0] sm:$0xff]  ;;  %p604_p8 = por %p603_p7, %p602_p6 }
  0x16   :  { %483 = vmatpush3.msra.mxu1 %v149_v6  ;;  %v233_v21 = vld [vmem:[#allocation2 + $0xc0] sm:$0xff]  ;;  %v230_v24 = vld [vmem:[#allocation2 + $0xa8] sm:$0xff]  ;;  %v228_v26 = vld [vmem:[#allocation2 + $0x98] sm:$0xff] }
  0x17   :  { %484 = vmatprep.subr.mxu1 %v624_v0  ;;  %516 = vmatpush3.msra.mxu0 %v233_v21  ;;  %v229_v25 = vld [vmem:[#allocation2 + $0xa0] sm:$0xff]  ;;  %v227_v39 = vld [vmem:[#allocation2 + $0x90] sm:$0xff]  ;;  %v226_v40 = vld [vmem:[#allocation2 + $0x88] sm:$0xff]  ;;  %p605_p9 = pnand %p604_p8, %p598_p5 }
  0x18   :  { %485 = vmatpush3.msra.mxu1 %v148_v7  ;;  %517 = vmatprep.subr.mxu0 %v624_v0  ;;  %v425_v27 = vld [vmem:[%s739_s3 + $0x2] ss:$0 sm:$0xff]  ;;  %v422_v30 = vld [vmem:[%s739_s3] ss:$0 sm:$0xff]  ;;  %v426_v41 = vld [vmem:[%s739_s3 + $0x1] ss:$0 sm:$0xff] }
  0x19   :  { %486 = vmatprep.subr.mxu1 %v624_v0  ;;  %518 = vmatpush3.msra.mxu0 %v232_v22  ;;  %v330_v44 = vld [vmem:[#allocation2 + $0x140] sm:$0xff]  ;;  %v329_v46 = vld [vmem:[#allocation2 + $0x138] sm:$0xff]  ;;  %v328_v47 = vld [vmem:[#allocation2 + $0x130] sm:$0xff] }
  0x1a   :  { %487 = vmatpush3.msra.mxu1 %v147_v8  ;;  %519 = vmatprep.subr.mxu0 %v624_v0  ;;  %v327_v48 = vld [vmem:[#allocation2 + $0x128] sm:$0xff]  ;;  %v326_v49 = vld [vmem:[#allocation2 + $0x120] sm:$0xff]  ;;  %v325_v50 = vld [vmem:[#allocation2 + $0x118] sm:$0xff] }
  0x1b   :  { %488 = vmatprep.subr.mxu1 %v624_v0  ;;  %520 = vmatpush3.msra.mxu0 %v231_v23  ;;  %v324_v51 = vld [vmem:[#allocation2 + $0x110] sm:$0xff]  ;;  %v323_v52 = vld [vmem:[#allocation2 + $0x108] sm:$0xff]  ;;  %v322_v53 = vld [vmem:[#allocation2 + $0x100] sm:$0xff] }
  0x1c   :  { %489 = vmatpush3.msra.mxu1 %v146_v9  ;;  %521 = vmatprep.subr.mxu0 %v624_v0  ;;  %v321_v54 = vld [vmem:[#allocation2 + $0xf8] sm:$0xff]  ;;  %v320_v55 = vld [vmem:[#allocation2 + $0xf0] sm:$0xff]  ;;  %v319_v56 = vld [vmem:[#allocation2 + $0xe8] sm:$0xff] }
  0x1d   :  { %490 = vmatprep.subr.mxu1 %v624_v0  ;;  %522 = vmatpush3.msra.mxu0 %v230_v24  ;;  %v318_v57 = vld [vmem:[#allocation2 + $0xe0] sm:$0xff]  ;;  %v317_v58 = vld [vmem:[#allocation2 + $0xd8] sm:$0xff]  ;;  %v316_v59 = vld [vmem:[#allocation2 + $0xd0] sm:$0xff] }
  0x1e   :  { %491 = vmatpush3.msra.mxu1 %v145_v10  ;;  %523 = vmatprep.subr.mxu0 %v624_v0  ;;  %v315_v60 = vld [vmem:[#allocation2 + $0xc8] sm:$0xff]  ;;  %v427_v61 = vld [vmem:[%s739_s3 + $0x3] ss:$0 sm:$0xff]  ;;  %v429_v4 = vld [vmem:[%s739_s3 + $0x4] ss:$0 sm:$0xff] }
  0x1f   :  { %492 = vmatprep.subr.mxu1 %v624_v0  ;;  %524 = vmatpush3.msra.mxu0 %v229_v25 }
  0x20   :  { %493 = vmatpush3.msra.mxu1 %v144_v11  ;;  %525 = vmatprep.subr.mxu0 %v624_v0 }
  0x21   :  { %494 = vmatprep.subr.mxu1 %v624_v0  ;;  %526 = vmatpush3.msra.mxu0 %v228_v26 }
  0x22   :  { %495 = vmatpush3.msra.mxu1 %v143_v12  ;;  %527 = vmatprep.subr.mxu0 %v624_v0 }
  0x23   :  { %496 = vmatprep.subr.mxu1 %v624_v0  ;;  %528 = vmatpush3.msra.mxu0 %v227_v39 }
  0x24   :  { %497 = vmatpush3.msra.mxu1 %v142_v13  ;;  %529 = vmatprep.subr.mxu0 %v624_v0 }
  0x25   :  { %498 = vmatprep.subr.mxu1 %v624_v0  ;;  %530 = vmatpush3.msra.mxu0 %v226_v40 }
  0x26   :  { %499 = vmatpush3.msra.mxu1 %v141_v14  ;;  %534 = vmatprep.subr.mxu0 %v624_v0 }
  0x27   :  { %500 = vmatprep.subr.mxu1 %v624_v0 }
  0x28   :  { %501 = vmatpush3.msra.mxu1 %v140_v15 }
  0x29   :  { %502 = vmatprep.subr.mxu1 %v624_v0 }
  0x2a   :  { %503 = vmatpush3.msra.mxu1 %v139_v16 }
  0x2b   :  { %504 = vmatprep.subr.mxu1 %v624_v0 }
  0x2c   :  { %505 = vmatpush3.msra.mxu1 %v138_v17 }
  0x2d   :  { %506 = vmatprep.subr.mxu1 %v624_v0 }
  0x2e   :  { %507 = vmatpush3.msra.mxu1 %v137_v18 }
  0x2f   :  { %508 = vmatprep.subr.mxu1 %v624_v0 }
  0x30   :  { %509 = vmatpush3.msra.mxu1 %v136_v19 }
  0x31   :  { %510 = vmatprep.subr.mxu1 %v624_v0 }
  0x32   :  { %511 = vmatpush3.msra.mxu1 %v135_v20 }
  0x8d   :  { %v122_v28 = vpop.permute.xlu0 %121 }
  0x8e   :  { %v128_v31 = vmul.f32 %v425_v27, %v122_v28 }
  0xd2   :  { %v114_v32 = vpop.f32.mrf.mxu1 }
  0xd3   :  { %v115_v34 = vadd.f32 %v422_v30, %v114_v32 }
  0xd4   :  { %v479_v35 = vpop.f32.mrf.mxu1 }
  0xd5   :  { %v129_v36 = vadd.f32 %v128_v31, %v115_v34 }
  0xd7   :  { %v133_v37 = vmax.f32 %v129_v36, 0.0 }
  0xd9   :  { %v134_v38 = vsel %vm132_vm3, %v133_v37, %v129_v36 }
  0xda   :  { %513 = vmatmul.mubr.f32.vlgmr.msra.gmra.mxu1 %v134_v38 }
 0x19a   :  { %v222_v42 = vpop.f32.mrf.mxu1 }
 0x19b   :  { %v223_v43 = vadd.f32 %v426_v41, %v222_v42 }
 0x19c   :  { %v514_v45 = vpop.f32.mrf.mxu1 }
 0x19d   :  { %532 = vmatmul.mubr.msk.f32.vlgmr.msra.gmra.mxu0 %vm239_vm4, %v223_v43 }
 0x19e   :  { %535 = vmatpush3.msra.mxu0 %v330_v44  ;;  %566 = vmatprep.mubr.msk.f32.mxu0 %vm625_vm0, %v624_v0 }
 0x19f   :  { %536 = vmatprep.subr.mxu0 %v624_v0 }
 0x1a0   :  { %537 = vmatpush3.msra.mxu0 %v329_v46 }
 0x1a1   :  { %538 = vmatprep.subr.mxu0 %v624_v0 }
 0x1a2   :  { %539 = vmatpush3.msra.mxu0 %v328_v47 }
 0x1a3   :  { %540 = vmatprep.subr.mxu0 %v624_v0 }
 0x1a4   :  { %541 = vmatpush3.msra.mxu0 %v327_v48 }
 0x1a5   :  { %542 = vmatprep.subr.mxu0 %v624_v0 }
 0x1a6   :  { %543 = vmatpush3.msra.mxu0 %v326_v49 }
 0x1a7   :  { %544 = vmatprep.subr.mxu0 %v624_v0 }
 0x1a8   :  { %545 = vmatpush3.msra.mxu0 %v325_v50 }
 0x1a9   :  { %546 = vmatprep.subr.mxu0 %v624_v0 }
 0x1aa   :  { %547 = vmatpush3.msra.mxu0 %v324_v51 }
 0x1ab   :  { %548 = vmatprep.subr.mxu0 %v624_v0 }
 0x1ac   :  { %549 = vmatpush3.msra.mxu0 %v323_v52 }
 0x1ad   :  { %550 = vmatprep.subr.mxu0 %v624_v0 }
 0x1ae   :  { %551 = vmatpush3.msra.mxu0 %v322_v53 }
 0x1af   :  { %552 = vmatprep.subr.mxu0 %v624_v0 }
 0x1b0   :  { %553 = vmatpush3.msra.mxu0 %v321_v54 }
 0x1b1   :  { %554 = vmatprep.subr.mxu0 %v624_v0 }
 0x1b2   :  { %555 = vmatpush3.msra.mxu0 %v320_v55 }
 0x1b3   :  { %556 = vmatprep.subr.mxu0 %v624_v0 }
 0x1b4   :  { %557 = vmatpush3.msra.mxu0 %v319_v56 }
 0x1b5   :  { %558 = vmatprep.subr.mxu0 %v624_v0 }
 0x1b6   :  { %559 = vmatpush3.msra.mxu0 %v318_v57 }
 0x1b7   :  { %560 = vmatprep.subr.mxu0 %v624_v0 }
 0x1b8   :  { %561 = vmatpush3.msra.mxu0 %v317_v58 }
 0x1b9   :  { %562 = vmatprep.subr.mxu0 %v624_v0 }
 0x1ba   :  { %563 = vmatpush3.msra.mxu0 %v316_v59 }
 0x1bb   :  { %564 = vmatprep.subr.mxu0 %v624_v0 }
 0x1bc   :  { %565 = vmatpush3.msra.mxu0 %v315_v60 }
 0x25d   :  { %v309_v62 = vpop.f32.mrf.mxu0 }
 0x25e   :  { %v310_v63 = vadd.f32 %v427_v61, %v309_v62 }
 0x25f   :  { %v533_v1 = vpop.f32.mrf.mxu0 }
 0x260   :  { %v313_v2 = vmax.f32 %v310_v63, 0.0 }
 0x262   :  { %v314_v3 = vsel %vm132_vm3, %v313_v2, %v310_v63 }
 0x263   :  { %567 = vmatmul.mubr.f32.vlgmr.msra.gmra.mxu0 %v314_v3 }
 0x323   :  { %v402_v0 = vpop.f32.mrf.mxu0 }
 0x324   :  { %v403_v5 = vadd.f32 %v429_v4, %v402_v0 }
 0x325   :  { %v568_v6 = vpop.f32.mrf.mxu0 }
 0x326   :  { %406 = vst [vmem:[#allocation5] sm:$0xff] %v403_v5 }
 0x327   :  { %608 = shalt.err (!%p605_p9)
}
 0x328   :  { %416 = dma.vmem_to_hbm [thread:$0]  %s414_s8, 128, %s740_s4, [#allocation4]  }
 0x329   :  { %619 = dma.done.wait [#allocation4], 128  }
 0x32a   :  { %620 = vsyncadd [#allocation4], 4294967168 }
 0x32b   :  { %420 = vsyncpa [#allocation3], 1 }
 0x32c   :  { %421 = vsyncpa [#allocation4], 1 }

</bundles_post_ra>
